<compile_context>
chip_gen: v5e
topology: v5e:2x2
jax: 0.10.0
libtpu: 0.0.40
codegen_flags: <defaults>
</compile_context>

<pallas_src>
import functools

import jax
import jax.numpy as jnp
from jax import lax
from jax.experimental import pallas as pl
from jax.experimental.pallas import tpu as pltpu


# ----------------------------------------------------------------------------
# Kernel 1: row-tiled linear projection  y = x @ W + b
# ----------------------------------------------------------------------------
def _linear_kernel(x_ref, w_ref, b_ref, o_ref):
    acc = jnp.dot(x_ref[...], w_ref[...], preferred_element_type=jnp.float32)
    o_ref[...] = acc + b_ref[...]


def linear(x2d, w, b, *, block_rows=256):
    """x2d: (N, d_in), w: (d_in, d_out), b: (d_out,) -> (N, d_out)."""
    N, d_in = x2d.shape
    d_out = w.shape[1]
    bm = min(block_rows, N)
    grid = (pl.cdiv(N, bm),)
    return pl.pallas_call(
        _linear_kernel,
        out_shape=jax.ShapeDtypeStruct((N, d_out), jnp.float32),
        grid=grid,
        in_specs=[
            pl.BlockSpec((bm, d_in), lambda i: (i, 0)),
            pl.BlockSpec((d_in, d_out), lambda i: (0, 0)),   # weights resident
            pl.BlockSpec((1, d_out), lambda i: (0, 0)),      # bias resident
        ],
        out_specs=pl.BlockSpec((bm, d_out), lambda i: (i, 0)),
        compiler_params=pltpu.CompilerParams(
            dimension_semantics=("parallel",)),
    )(x2d, w, b.reshape(1, d_out))


def project_qkv(params, q2d, k2d, v2d, n_head, d_k, d_v, *, fused,
                block_rows=256):
    """Fused single-matmul QKV projection when q/k/v are the same activation."""
    if fused:
        w_qkv = jnp.concatenate([params["wq"], params["wk"], params["wv"]],
                                axis=1)
        b_qkv = jnp.concatenate([params["bq"], params["bk"], params["bv"]],
                                axis=0)
        out = linear(q2d, w_qkv, b_qkv, block_rows=block_rows)
        s1 = n_head * d_k
        s2 = 2 * n_head * d_k
        return out[:, :s1], out[:, s1:s2], out[:, s2:]
    qp = linear(q2d, params["wq"], params["bq"], block_rows=block_rows)
    kp = linear(k2d, params["wk"], params["bk"], block_rows=block_rows)
    vp = linear(v2d, params["wv"], params["bv"], block_rows=block_rows)
    return qp, kp, vp


# ----------------------------------------------------------------------------
# Kernel 2: scaled dot-product attention, all heads per grid step, Lq-tiled.
#   attn     = softmax((q / temperature) @ k^T)
#   log_attn = log_softmax(attn)      (applied to the softmax output, matching
#                                      the PyTorch module exactly)
#   out      = attn @ v               (emitted directly as (Lq, H*dv))
# ----------------------------------------------------------------------------
def _sdpa_kernel(n_head, d_k, d_v, inv_temp,
                 q_ref, k_ref, v_ref, o_ref, attn_ref, logattn_ref):
    q = q_ref[0]          # (Lq_t, H*dk)
    k = k_ref[0]          # (Lk,   H*dk)
    v = v_ref[0]          # (Lk,   H*dv)

    outs = []
    for h in range(n_head):
        qh = q[:, h * d_k:(h + 1) * d_k] * inv_temp           # (Lq_t, dk)
        kh = k[:, h * d_k:(h + 1) * d_k]                      # (Lk,   dk)
        vh = v[:, h * d_v:(h + 1) * d_v]                      # (Lk,   dv)

        # Contract the last dims directly -- no explicit K transpose (XLU free).
        scores = lax.dot_general(
            qh, kh, (((1,), (1,)), ((), ())),
            preferred_element_type=jnp.float32)               # (Lq_t, Lk)

        m = jnp.max(scores, axis=-1, keepdims=True)
        e = jnp.exp(scores - m)
        denom = jnp.sum(e, axis=-1, keepdims=True)
        attn = e * pl.reciprocal(denom, approx=True)          # softmax

        # log_softmax of the (already softmax-ed) attention (PyTorch ref).
        m2 = jnp.max(attn, axis=-1, keepdims=True)
        lse = jnp.log(jnp.sum(jnp.exp(attn - m2), axis=-1, keepdims=True)) + m2
        log_attn = attn - lse

        out_h = jnp.dot(attn, vh, preferred_element_type=jnp.float32)

        attn_ref[0, h] = attn
        logattn_ref[0, h] = log_attn
        outs.append(out_h)

    # Single lane-dense (Lq_t, H*dv) store.
    o_ref[0] = jnp.concatenate(outs, axis=-1)


def sdpa(qp, kp, vp, n_head, d_k, d_v, temperature, *, block_q=256):
    """qp: (B, Lq, H*dk), kp: (B, Lk, H*dk), vp: (B, Lk, H*dv)."""
    B, Lq, _ = qp.shape
    Lk = kp.shape[1]
    bq = min(block_q, Lq)
    grid = (B, pl.cdiv(Lq, bq))
    kern = functools.partial(_sdpa_kernel, n_head, d_k, d_v,
                             1.0 / float(temperature))
    return pl.pallas_call(
        kern,
        out_shape=(
            jax.ShapeDtypeStruct((B, Lq, n_head * d_v), jnp.float32),
            jax.ShapeDtypeStruct((B, n_head, Lq, Lk), jnp.float32),
            jax.ShapeDtypeStruct((B, n_head, Lq, Lk), jnp.float32),
        ),
        grid=grid,
        in_specs=[
            pl.BlockSpec((1, bq, n_head * d_k), lambda b, i: (b, i, 0)),
            pl.BlockSpec((1, Lk, n_head * d_k), lambda b, i: (b, 0, 0)),
            pl.BlockSpec((1, Lk, n_head * d_v), lambda b, i: (b, 0, 0)),
        ],
        out_specs=(
            pl.BlockSpec((1, bq, n_head * d_v), lambda b, i: (b, i, 0)),
            pl.BlockSpec((1, n_head, bq, Lk), lambda b, i: (b, 0, i, 0)),
            pl.BlockSpec((1, n_head, bq, Lk), lambda b, i: (b, 0, i, 0)),
        ),
        compiler_params=pltpu.CompilerParams(
            dimension_semantics=("parallel", "parallel")),
    )(qp, kp, vp)


# ----------------------------------------------------------------------------
# Kernel 3: row-tiled fused output projection + residual add + LayerNorm
#   fc_out = hs @ W_fc + b_fc          (dropout == identity in eval)
#   ln_out = LayerNorm(fc_out + residual)
# ----------------------------------------------------------------------------
def _fc_residual_ln_kernel(eps, hs_ref, w_ref, b_ref, res_ref, g_ref, beta_ref,
                           fc_ref, ln_ref):
    fc = jnp.dot(hs_ref[...], w_ref[...], preferred_element_type=jnp.float32)
    fc = fc + b_ref[...]
    fc_ref[...] = fc

    x = fc + res_ref[...]
    mean = jnp.mean(x, axis=-1, keepdims=True)
    centered = x - mean
    var = jnp.mean(centered * centered, axis=-1, keepdims=True)
    inv = lax.rsqrt(var + eps)
    ln_ref[...] = centered * inv * g_ref[...] + beta_ref[...]


def fc_residual_ln(hs2d, w_fc, b_fc, residual2d, gamma, beta, eps=1e-5,
                   *, block_rows=256):
    """hs2d: (N, H*dv), residual2d: (N, d_model) -> (fc_out, ln_out)."""
    N, hdv = hs2d.shape
    d_model = w_fc.shape[1]
    bm = min(block_rows, N)
    grid = (pl.cdiv(N, bm),)
    kern = functools.partial(_fc_residual_ln_kernel, float(eps))
    return pl.pallas_call(
        kern,
        out_shape=(
            jax.ShapeDtypeStruct((N, d_model), jnp.float32),
            jax.ShapeDtypeStruct((N, d_model), jnp.float32),
        ),
        grid=grid,
        in_specs=[
            pl.BlockSpec((bm, hdv), lambda i: (i, 0)),
            pl.BlockSpec((hdv, d_model), lambda i: (0, 0)),   # weights resident
            pl.BlockSpec((1, d_model), lambda i: (0, 0)),     # bias resident
            pl.BlockSpec((bm, d_model), lambda i: (i, 0)),
            pl.BlockSpec((1, d_model), lambda i: (0, 0)),     # gamma resident
            pl.BlockSpec((1, d_model), lambda i: (0, 0)),     # beta resident
        ],
        out_specs=(
            pl.BlockSpec((bm, d_model), lambda i: (i, 0)),
            pl.BlockSpec((bm, d_model), lambda i: (i, 0)),
        ),
        compiler_params=pltpu.CompilerParams(
            dimension_semantics=("parallel",)),
    )(hs2d, w_fc, b_fc.reshape(1, d_model), residual2d,
      gamma.reshape(1, d_model), beta.reshape(1, d_model))


# ----------------------------------------------------------------------------
# MultiHeadAttention forward (glue in plain JAX, hot paths in Pallas)
# ----------------------------------------------------------------------------
def init_params(key, n_head, d_model, d_k, d_v):
    ks = jax.random.split(key, 8)
    scale = 0.05
    return {
        "wq": jax.random.normal(ks[0], (d_model, n_head * d_k), jnp.float32) * scale,
        "bq": jax.random.normal(ks[1], (n_head * d_k,), jnp.float32) * scale,
        "wk": jax.random.normal(ks[2], (d_model, n_head * d_k), jnp.float32) * scale,
        "bk": jax.random.normal(ks[3], (n_head * d_k,), jnp.float32) * scale,
        "wv": jax.random.normal(ks[4], (d_model, n_head * d_v), jnp.float32) * scale,
        "bv": jax.random.normal(ks[5], (n_head * d_v,), jnp.float32) * scale,
        "wfc": jax.random.normal(ks[6], (n_head * d_v, d_model), jnp.float32) * scale,
        "bfc": jax.random.normal(ks[7], (d_model,), jnp.float32) * scale,
        "ln_gamma": jnp.ones((d_model,), jnp.float32),
        "ln_beta": jnp.zeros((d_model,), jnp.float32),
    }


def multi_head_attention(params, q, k, v, n_head, d_k, d_v, *,
                         block_rows=256, block_q=256):
    # q, k, v: (B, L, d_model) float32
    B, Lq, d_model = q.shape
    Lk = k.shape[1]
    Lv = v.shape[1]
    residual = q

    # Fuse the three projections into one matmul pass when this is
    # self-attention (same activation tensor for q, k and v).
    fused = (q is k) and (k is v)
    qp, kp, vp = project_qkv(
        params,
        q.reshape(B * Lq, d_model),
        k.reshape(B * Lk, d_model),
        v.reshape(B * Lv, d_model),
        n_head, d_k, d_v, fused=fused, block_rows=block_rows)

    # Keep feature-last (B, L, H*d) layout on the compute path — no transposes.
    qp = qp.reshape(B, Lq, n_head * d_k)
    kp = kp.reshape(B, Lk, n_head * d_k)
    vp = vp.reshape(B, Lv, n_head * d_v)

    # Scaled dot-product attention (Pallas kernel), temperature = sqrt(d_k).
    out, attn, log_attn = sdpa(qp, kp, vp, n_head, d_k, d_v,
                               temperature=d_k ** 0.5, block_q=block_q)

    # fc + dropout(identity) + residual + LayerNorm (fused, row-tiled kernel).
    fc_out, ln_out = fc_residual_ln(
        out.reshape(B * Lq, n_head * d_v),
        params["wfc"], params["bfc"],
        residual.reshape(B * Lq, d_model),
        params["ln_gamma"], params["ln_beta"],
        eps=1e-5, block_rows=block_rows)
    fc_out = fc_out.reshape(B, Lq, d_model)
    ln_out = ln_out.reshape(B, Lq, d_model)

    # Per-head (B, H, L, d) views are produced ONLY for the returned sa_output
    # dict (module faithfulness); they are not on the compute path.
    qh = qp.reshape(B, Lq, n_head, d_k).transpose(0, 2, 1, 3)
    out_heads = out.reshape(B, Lq, n_head, d_v).transpose(0, 2, 1, 3)

    return {
        "input": residual,
        "output": ln_out,
        "sa_output": {"input": qh, "output": out_heads, "attn": attn,
                      "log_attn": log_attn},
        "fc_output": fc_out,
    }


if __name__ == "__main__":
    # Small shapes consistent with the module.
    B, L, d_model = 2, 8, 32
    n_head, d_k, d_v = 4, 8, 8

    key = jax.random.PRNGKey(0)
    kp_, kq, kk, kv = jax.random.split(key, 4)
    params = init_params(kp_, n_head, d_model, d_k, d_v)

    # 1) Self-attention (q is k is v) — exercises the fused QKV projection.
    x = jax.random.normal(kq, (B, L, d_model), jnp.float32)
    res_self = multi_head_attention(params, x, x, x, n_head, d_k, d_v)
    jax.block_until_ready(res_self["output"])
    jax.block_until_ready(res_self["sa_output"]["attn"])

    # 2) Distinct q / k / v — exercises the general projection path.
    q = jax.random.normal(kq, (B, L, d_model), jnp.float32)
    k = jax.random.normal(kk, (B, L, d_model), jnp.float32)
    v = jax.random.normal(kv, (B, L, d_model), jnp.float32)
    res = multi_head_attention(params, q, k, v, n_head, d_k, d_v)
    jax.block_until_ready(res["output"])
    jax.block_until_ready(res["fc_output"])
    jax.block_until_ready(res["sa_output"]["attn"])
    jax.block_until_ready(res["sa_output"]["log_attn"])

    print("KERNEL_OK")
</pallas_src>

<mosaic_0001>
module attributes {stable_mosaic.version = 11 : i64} {
  func.func @_linear_kernel(%arg0: i32, %arg1: memref<16x32xf32, #tpu.memory_space<vmem>>, %arg2: memref<32x96xf32, #tpu.memory_space<vmem>>, %arg3: memref<1x96xf32, #tpu.memory_space<vmem>>, %arg4: memref<16x96xf32, #tpu.memory_space<vmem>>) attributes {dimension_semantics = [#tpu.dimension_semantics<parallel>], iteration_bounds = array<i64: 1>, scalar_prefetch = 0 : i64, scratch_operands = 0 : i64, tpu.core_type = #tpu.core_type<tc>, window_params = [{transform_indices = @transform_0, window_bounds = array<i64: 16, 32>}, {pipeline_mode = #tpu.pipeline_mode<synchronous>, transform_indices = @transform_1, window_bounds = array<i64: 32, 96>}, {pipeline_mode = #tpu.pipeline_mode<synchronous>, transform_indices = @transform_2, window_bounds = array<i64: 1, 96>}, {transform_indices = @transform_3, window_bounds = array<i64: 16, 96>}]} {
    %c0 = arith.constant 0 : index
    %c0_0 = arith.constant 0 : index
    %0 = vector.load %arg1[%c0, %c0_0] : memref<16x32xf32, #tpu.memory_space<vmem>>, vector<16x32xf32>
    %c0_1 = arith.constant 0 : index
    %c0_2 = arith.constant 0 : index
    %1 = vector.load %arg2[%c0_1, %c0_2] : memref<32x96xf32, #tpu.memory_space<vmem>>, vector<32x96xf32>
    %cst = arith.constant dense<0.000000e+00> : vector<16x96xf32>
    %2 = tpu.matmul %0, %1, %cst {dimension_numbers = #tpu.dot_dimension_numbers<[1], [0], [0], [1], [0, 0, 1, 1], [], []>} : vector<16x32xf32>, vector<32x96xf32>, vector<16x96xf32> -> vector<16x96xf32>
    %c0_3 = arith.constant 0 : index
    %c0_4 = arith.constant 0 : index
    %3 = vector.load %arg3[%c0_3, %c0_4] : memref<1x96xf32, #tpu.memory_space<vmem>>, vector<1x96xf32>
    %4 = vector.broadcast %3 : vector<1x96xf32> to vector<16x96xf32>
    %5 = arith.addf %2, %4 : vector<16x96xf32>
    %c0_5 = arith.constant 0 : index
    %c0_6 = arith.constant 0 : index
    %6 = vector.load %arg4[%c0_5, %c0_6] : memref<16x96xf32, #tpu.memory_space<vmem>>, vector<16x96xf32>
    tpu.vector_store %arg4[%c0_5, %c0_6], %5 {strides = array<i32>} : memref<16x96xf32, #tpu.memory_space<vmem>>, vector<16x96xf32>,
    return
  }
  func.func @transform_0(%arg0: i32) -> (i32, i32) {
    %c0_i32 = arith.constant 0 : i32
    %c0_i32_0 = arith.constant 0 : i32
    return %arg0, %c0_i32 : i32, i32
  }
  func.func @transform_1(%arg0: i32) -> (i32, i32) {
    %c0_i32 = arith.constant 0 : i32
    %c0_i32_0 = arith.constant 0 : i32
    %c0_i32_1 = arith.constant 0 : i32
    return %c0_i32, %c0_i32_0 : i32, i32
  }
  func.func @transform_2(%arg0: i32) -> (i32, i32) {
    %c0_i32 = arith.constant 0 : i32
    %c0_i32_0 = arith.constant 0 : i32
    %c0_i32_1 = arith.constant 0 : i32
    return %c0_i32, %c0_i32_0 : i32, i32
  }
  func.func @transform_3(%arg0: i32) -> (i32, i32) {
    %c0_i32 = arith.constant 0 : i32
    %c0_i32_0 = arith.constant 0 : i32
    return %arg0, %c0_i32 : i32, i32
  }
}

</mosaic_0001>

<bundles_post_ra>
// kernel: tpu_custom_call.1
= control target key start
LH: loop header
LB: loop body
LE: loop exit
PB: predicated region body
PF: predicated region fallthrough
CT: control target
= control target key end

     0   :  { %8 = vsyncpa [#allocation3], 0  ;;  %s246_s0 = inlined_call_operand.hbm [shape: f32[16,32], index: 0, kind: input, shape index: {}]   ;;  %s247_s1 = inlined_call_operand.hbm [shape: f32[32,96], index: 1, kind: input, shape index: {}]   ;;  %s248_s2 = inlined_call_operand.vmem [shape: f32[1,96], index: 2, kind: input, shape index: {}]   ;;  %s249_s3 = inlined_call_operand.hbm [shape: f32[16,96], index: 3, kind: output, shape index: {}]  }
   0x1   :  { %9 = vsyncpa [#allocation6], 0 }
   0x2   :  { %10 = vsyncpa [#allocation4], 0  ;;  %s15_s14 = sshll.u32 %s246_s0, 4  ;;  %s200_s15 = smov [#allocation2]   ;;  %s16_s14 = int_to_ptr.hbm [resolvable:$true] %s15_s14 }
   0x3   :  { %s17_s16 = sshll.u32 %s200_s15, 4  ;;  %s28_s19 = sshll.u32 %s247_s1, 4  ;;  %s18_s16 = int_to_ptr.vmem [resolvable:$true] %s17_s16  ;;  %s29_s19 = int_to_ptr.hbm [resolvable:$true] %s28_s19 }
   0x4   :  { %s201_s20 = smov 128   ;;  %s202_s21 = smov 8  }
   0x5   :  { %23 = dma.hbm_to_vmem [thread:$0]  %s16_s14, 256, %s18_s16, [#allocation3], %s201_s20, %s201_s20, %s202_s21  }
   0x6   :  { %s203_s22 = smov [#allocation5]  }
   0x7   :  { %s30_s23 = sshll.u32 %s203_s22, 4  ;;  %s31_s23 = int_to_ptr.vmem [resolvable:$true] %s30_s23 }
   0x8   :  { %36 = dma.hbm_to_vmem [thread:$0]  %s29_s19, 512, %s31_s23, [#allocation6], %s201_s20, %s201_s20, %s202_s21  }
   0x9   :  { %194 = dma.done.wait [#allocation3], 256  }
   0xa   :  { %195 = vsyncadd [#allocation3], 4294967040 }
   0xb   :  { %196 = dma.done.wait [#allocation6], 512  }
   0xc   :  { %197 = vsyncadd [#allocation6], 4294966784  ;;  %v52_v0 = vld [vmem:[#allocation5 + $0x18] sm:$0xff]  ;;  %v51_v1 = vld [vmem:[#allocation5 + $0x10] sm:$0xff]  ;;  %vm57_vm0 = vcmask 261120   ;;  %s204_s24 = smov [#allocation7]  }
   0xd   :  { %76 = vmatpush.msra.mxu0 %v52_v0  ;;  %112 = vmatpush.msra.mxu1 %v52_v0  ;;  %v50_v2 = vld [vmem:[#allocation5 + $0x8] sm:$0xff]  ;;  %v49_v3 = vld [vmem:[#allocation5] sm:$0xff]  ;;  %v47_v4 = vld [vmem:[#allocation2] sm:$0xff]  ;;  %s94_s25 = sshll.u32 %s204_s24, 4  ;;  %s96_s28 = sshll.u32 %s249_s3, 4  ;;  %vm87_vm1 = vcmask 785408   ;;  %s95_s25 = int_to_ptr.vmem [resolvable:$true] %s94_s25  ;;  %s97_s28 = int_to_ptr.hbm [resolvable:$true] %s96_s28 }
   0xe   :  { %v48_v5 = vld [vmem:[#allocation2 + $0x8] sm:$0xff]  ;;  %v121_v6 = vld [vmem:[%s248_s2] ss:$0 sm:$0xff] }
   0xf   :  { %77 = vmatpush.msra.mxu0 %v51_v1  ;;  %113 = vmatpush.msra.mxu1 %v51_v1 }
  0x11   :  { %78 = vmatpush.msra.mxu0 %v50_v2  ;;  %114 = vmatpush.msra.mxu1 %v50_v2 }
  0x13   :  { %79 = vmatpush.msra.mxu0 %v49_v3  ;;  %115 = vmatpush.msra.mxu1 %v49_v3 }
  0x14   :  { %110 = vmatmul.msk.f32.vlgmr.msra.gmra.mxu0 %vm57_vm0, %v47_v4  ;;  %111 = vmatmul.msk.f32.vlgmr.msra.gmra.mxu1 %vm57_vm0, %v48_v5 }
  0x91   :  { %v81_v7 = vpop.f32.mrf.mxu0  ;;  %v84_v8 = vpop.f32.mrf.mxu1 }
  0x92   :  { %v82_v9 = vadd.f32 %v121_v6, %v81_v7  ;;  %v85_v10 = vadd.f32 %v121_v6, %v84_v8 }
  0x94   :  { %88 = vst.msk [vmem:[#allocation7] sm:$0xff] %vm87_vm1, %v82_v9 }
  0x95   :  { %89 = vst.msk [vmem:[#allocation7 + $0x8] sm:$0xff] %vm87_vm1, %v85_v10 }
  0x96   :  { %102 = dma.vmem_to_hbm [thread:$0]  %s95_s25, 256, %s97_s28, [#allocation4], %s201_s20, %s201_s20, %s202_s21  }
  0x97   :  { %198 = dma.done.wait [#allocation4], 256  }
  0x98   :  { %199 = vsyncadd [#allocation4], 4294967040 }
  0x99   :  { %107 = vsyncpa [#allocation3], 1 }
  0x9a   :  { %108 = vsyncpa [#allocation6], 1 }
  0x9b   :  { %109 = vsyncpa [#allocation4], 1 }

</bundles_post_ra>
